<compile_context>
chip_gen: v7x
topology: tpu7x:2x2x1
jax: 0.10.0
libtpu: 0.0.40
codegen_flags: <defaults>
</compile_context>

<pallas_src>
import functools

import jax
import jax.numpy as jnp
from jax import lax
from jax.experimental import pallas as pl
from jax.experimental.pallas import tpu as pltpu


_LN_EPS = 1e-5                       # nn.LayerNorm default


def _query_vmem_bytes():
    try:
        return int(pltpu.get_tpu_info().vmem_capacity_bytes)
    except Exception:                # pragma: no cover - older jax / no TPU info
        return 64 * 1024 * 1024      # conservative fallback (v7x per-TC VMEM)


_VMEM_PHYS_BYTES = _query_vmem_bytes()
_VMEM_LIMIT_BYTES = min((_VMEM_PHYS_BYTES * 3) // 4, 100 * 1024 * 1024)
_TILE_BUDGET_BYTES = (8 * 1024 * 1024 if _VMEM_PHYS_BYTES >= 100 * 1024 * 1024
                      else 4 * 1024 * 1024)


def _compiler_params(n_axes, semantics=None):
    if semantics is None:
        semantics = ("parallel",) * n_axes
    return pltpu.CompilerParams(dimension_semantics=semantics,
                                vmem_limit_bytes=_VMEM_LIMIT_BYTES)


def _round_up(x, m):
    return ((x + m - 1) // m) * m


def _row_tile_and_pad(M, per_row_bytes, max_rows=1024):
    """Row tile (multiple of 8) within budget + padded row count."""
    cap = _TILE_BUDGET_BYTES // max(per_row_bytes, 1)
    cap = max(8, min(max_rows, cap))
    cap -= cap % 8
    cap = max(cap, 8)
    n_tiles = -(-M // cap)
    tm = _round_up(-(-M // n_tiles), 8)
    return tm, tm * n_tiles


def _pad_rows(x2d, mp):
    m = x2d.shape[0]
    if mp == m:
        return x2d
    return jnp.pad(x2d, ((0, mp - m), (0, 0)))


def _col_tile(N, K):
    """Largest lane-aligned column tile dividing N whose bf16 weight fits."""
    for t in (1024, 512, 256, 128):
        if N % t == 0 and N // t >= 2 and 2 * (2 * K * t) <= _TILE_BUDGET_BYTES:
            return t
    return N


def _ffn_h_tile(E, H):
    """Hidden-dim tile (multiple of 128 dividing H) fitting the budget."""
    if H % 128 != 0:
        return H
    budget = max(_TILE_BUDGET_BYTES, 2 * 2 * (2 * E * 128))
    best, t = 128, 128
    while t <= H:
        if H % t == 0 and 2 * 2 * (2 * E * t) <= budget:
            best = t
        t += 128
    return best


# ----------------------------------------------------------------------------
# Shared in-kernel helpers (traced inside kernels; f32 elementwise, bf16 MXU)
# ----------------------------------------------------------------------------
def _layernorm(z, g, b, eps):
    mean = jnp.mean(z, axis=-1, keepdims=True)
    var = jnp.mean((z - mean) ** 2, axis=-1, keepdims=True)   # biased, like torch
    return (z - mean) * lax.rsqrt(var + eps) * g + b


def _attention_core(q, k, v, wo_ref, attn_ref, heads, inv_scale, causal):
    """Per-head softmax attention -> lane-dense scratch -> output projection."""
    L, E = q.shape
    Lk = k.shape[0]
    Dh = E // heads
    if causal:
        row = lax.broadcasted_iota(jnp.int32, (L, Lk), 0)
        col = lax.broadcasted_iota(jnp.int32, (L, Lk), 1)
        mask = col < row          # torch quirk: mask k < q (strictly lower tri)
    for h in range(heads):        # static unroll over heads
        sl = slice(h * Dh, (h + 1) * Dh)
        qh = q[:, sl].astype(jnp.bfloat16)
        kh = k[:, sl].astype(jnp.bfloat16)
        vh = v[:, sl].astype(jnp.bfloat16)
        # contract last dims of both (no transpose materialized)
        s = lax.dot_general(qh, kh, (((1,), (1,)), ((), ())),
                            preferred_element_type=jnp.float32)    # (L, Lk)
        if causal:
            # masked_fill_(-1e9) happens BEFORE dividing by scale (torch quirk)
            s = jnp.where(mask, jnp.float32(-1.0e9), s)
        s = s * inv_scale
        m = jnp.max(s, axis=-1, keepdims=True)
        e = jnp.exp(s - m)
        denom = jnp.sum(e, axis=-1, keepdims=True)
        p = (e * pl.reciprocal(denom)).astype(jnp.bfloat16)        # exact recip
        attn_ref[:, sl] = jnp.dot(p, vh, preferred_element_type=jnp.float32)
    # one big lane-dense output projection from the scratch slab
    return jnp.dot(attn_ref[...].astype(jnp.bfloat16), wo_ref[...],
                   preferred_element_type=jnp.float32)


# ----------------------------------------------------------------------------
# Pallas kernels
# ----------------------------------------------------------------------------
def _self_attn_block_kernel(x_ref, wqkv_ref, bqkv_ref, wo_ref, bo_ref,
                            g_ref, beta_ref, o_ref, attn_ref, *,
                            heads, scale, causal, eps):
    """Fused QKV proj + MHA + output proj + residual + LayerNorm (one batch)."""
    x = x_ref[...]                                            # (L, E) f32
    E = x.shape[-1]
    qkv = jnp.dot(x.astype(jnp.bfloat16), wqkv_ref[...],
                  preferred_element_type=jnp.float32) + bqkv_ref[...]
    q = qkv[:, :E]
    k = qkv[:, E:2 * E]
    v = qkv[:, 2 * E:]
    y = _attention_core(q, k, v, wo_ref, attn_ref, heads,
                        jnp.float32(1.0 / scale), causal)
    z = x + y + bo_ref[...]                                   # residual + out bias
    o_ref[...] = _layernorm(z, g_ref[...], beta_ref[...], eps)


def _cross_attn_block_kernel(tq_ref, enc_ref, res_ref, wq_ref, bq_ref,
                             wkv_ref, bkv_ref, wo_ref, bo_ref, g_ref,
                             beta_ref, o_ref, attn_ref, *, heads, scale, eps):
    """Fused Q / KV proj + cross-MHA + output proj + residual + LayerNorm."""
    E = tq_ref.shape[-1]
    q = jnp.dot(tq_ref[...].astype(jnp.bfloat16), wq_ref[...],
                preferred_element_type=jnp.float32) + bq_ref[...]
    kv = jnp.dot(enc_ref[...].astype(jnp.bfloat16), wkv_ref[...],
                 preferred_element_type=jnp.float32) + bkv_ref[...]
    k = kv[:, :E]
    v = kv[:, E:]
    y = _attention_core(q, k, v, wo_ref, attn_ref, heads,
                        jnp.float32(1.0 / scale), causal=False)
    z = res_ref[...] + y + bo_ref[...]
    o_ref[...] = _layernorm(z, g_ref[...], beta_ref[...], eps)


def _ffn_ln_kernel(x_ref, w1_ref, b1_ref, w2_ref, b2_ref, g_ref, beta_ref,
                   o_ref, acc_ref, *, eps):
    """LayerNorm(x + linear2(relu(linear1(x)))), H streamed over grid axis 1."""
    j = pl.program_id(1)

    @pl.when(j == 0)
    def _():
        acc_ref[...] = jnp.zeros_like(acc_ref)

    x = x_ref[...]
    h = jnp.dot(x.astype(jnp.bfloat16), w1_ref[...],
                preferred_element_type=jnp.float32) + b1_ref[...]
    h = jnp.maximum(h, 0.0)
    acc_ref[...] += jnp.dot(h.astype(jnp.bfloat16), w2_ref[...],
                            preferred_element_type=jnp.float32)

    @pl.when(j == pl.num_programs(1) - 1)
    def _():
        z = x + acc_ref[...] + b2_ref[...]
        o_ref[...] = _layernorm(z, g_ref[...], beta_ref[...], eps)


def _linear_kernel(x_ref, w_ref, b_ref, o_ref):
    o_ref[...] = jnp.dot(x_ref[...].astype(jnp.bfloat16), w_ref[...],
                         preferred_element_type=jnp.float32) + b_ref[...]


# ----------------------------------------------------------------------------
# Pallas wrappers
# ----------------------------------------------------------------------------
def self_attention_block(x3, wqkv, bqkv, wo, bo, gamma, beta, heads, causal,
                         eps=_LN_EPS):
    """LayerNorm(x + linearOut(MHA(x, x, x))), one pallas_call, (B, L, E)."""
    B, L, E = x3.shape
    scale = (E / heads) ** 0.5
    kern = functools.partial(_self_attn_block_kernel, heads=heads, scale=scale,
                             causal=causal, eps=eps)
    return pl.pallas_call(
        kern,
        out_shape=jax.ShapeDtypeStruct((B, L, E), jnp.float32),
        grid=(B,),
        in_specs=[
            pl.BlockSpec((None, L, E), lambda b: (b, 0, 0)),
            pl.BlockSpec((E, 3 * E), lambda b: (0, 0)),
            pl.BlockSpec((1, 3 * E), lambda b: (0, 0)),
            pl.BlockSpec((E, E), lambda b: (0, 0)),
            pl.BlockSpec((1, E), lambda b: (0, 0)),
            pl.BlockSpec((1, E), lambda b: (0, 0)),
            pl.BlockSpec((1, E), lambda b: (0, 0)),
        ],
        out_specs=pl.BlockSpec((None, L, E), lambda b: (b, 0, 0)),
        scratch_shapes=[pltpu.VMEM((L, E), jnp.float32)],
        compiler_params=_compiler_params(1),
    )(x3, wqkv, bqkv.reshape(1, 3 * E), wo, bo.reshape(1, E),
      gamma.reshape(1, E), beta.reshape(1, E))


def cross_attention_block(tq3, enc3, res3, attn_p, gamma, beta, heads,
                          eps=_LN_EPS):
    """LayerNorm(res + linearOut(MHA(tq, enc, enc))), one pallas_call."""
    B, L, E = tq3.shape
    Ls = enc3.shape[1]
    scale = (E / heads) ** 0.5
    kern = functools.partial(_cross_attn_block_kernel, heads=heads, scale=scale,
                             eps=eps)
    return pl.pallas_call(
        kern,
        out_shape=jax.ShapeDtypeStruct((B, L, E), jnp.float32),
        grid=(B,),
        in_specs=[
            pl.BlockSpec((None, L, E), lambda b: (b, 0, 0)),
            pl.BlockSpec((None, Ls, E), lambda b: (b, 0, 0)),
            pl.BlockSpec((None, L, E), lambda b: (b, 0, 0)),
            pl.BlockSpec((E, E), lambda b: (0, 0)),
            pl.BlockSpec((1, E), lambda b: (0, 0)),
            pl.BlockSpec((E, 2 * E), lambda b: (0, 0)),
            pl.BlockSpec((1, 2 * E), lambda b: (0, 0)),
            pl.BlockSpec((E, E), lambda b: (0, 0)),
            pl.BlockSpec((1, E), lambda b: (0, 0)),
            pl.BlockSpec((1, E), lambda b: (0, 0)),
            pl.BlockSpec((1, E), lambda b: (0, 0)),
        ],
        out_specs=pl.BlockSpec((None, L, E), lambda b: (b, 0, 0)),
        scratch_shapes=[pltpu.VMEM((L, E), jnp.float32)],
        compiler_params=_compiler_params(1),
    )(tq3, enc3, res3,
      attn_p["w_q"], attn_p["b_q"].reshape(1, E),
      attn_p["w_kv"], attn_p["b_kv"].reshape(1, 2 * E),
      attn_p["w_o"], attn_p["b_o"].reshape(1, E),
      gamma.reshape(1, E), beta.reshape(1, E))


def ffn_residual_ln(x2d, w1, b1, w2, b2, gamma, beta, eps=_LN_EPS):
    M, E = x2d.shape
    H = w1.shape[1]
    TM, Mp = _row_tile_and_pad(M, per_row_bytes=4 * 3 * E)
    TH = _ffn_h_tile(E, H)
    xp = _pad_rows(x2d, Mp)
    out = pl.pallas_call(
        functools.partial(_ffn_ln_kernel, eps=eps),
        out_shape=jax.ShapeDtypeStruct((Mp, E), jnp.float32),
        grid=(Mp // TM, H // TH),
        in_specs=[
            pl.BlockSpec((TM, E), lambda i, j: (i, 0)),
            pl.BlockSpec((E, TH), lambda i, j: (0, j)),
            pl.BlockSpec((1, TH), lambda i, j: (0, j)),
            pl.BlockSpec((TH, E), lambda i, j: (j, 0)),
            pl.BlockSpec((1, E), lambda i, j: (0, 0)),
            pl.BlockSpec((1, E), lambda i, j: (0, 0)),
            pl.BlockSpec((1, E), lambda i, j: (0, 0)),
        ],
        out_specs=pl.BlockSpec((TM, E), lambda i, j: (i, 0)),
        scratch_shapes=[pltpu.VMEM((TM, E), jnp.float32)],
        compiler_params=_compiler_params(2, ("parallel", "arbitrary")),
    )(xp, w1, b1.reshape(1, H), w2, b2.reshape(1, E),
      gamma.reshape(1, E), beta.reshape(1, E))
    return out[:M] if Mp != M else out


def linear(x2d, w_io, b):
    """y = x @ w_io + b; w_io stored (in, out) bf16; M and N both tiled."""
    M, K = x2d.shape
    N = w_io.shape[1]
    TN = _col_tile(N, K)
    TM, Mp = _row_tile_and_pad(M, per_row_bytes=4 * (K + TN))
    xp = _pad_rows(x2d, Mp)
    out = pl.pallas_call(
        _linear_kernel,
        out_shape=jax.ShapeDtypeStruct((Mp, N), jnp.float32),
        grid=(Mp // TM, N // TN),
        in_specs=[
            pl.BlockSpec((TM, K), lambda i, j: (i, 0)),
            pl.BlockSpec((K, TN), lambda i, j: (0, j)),
            pl.BlockSpec((1, TN), lambda i, j: (0, j)),
        ],
        out_specs=pl.BlockSpec((TM, TN), lambda i, j: (i, j)),
        compiler_params=_compiler_params(2),
    )(xp, w_io, b.reshape(1, N))
    return out[:M] if Mp != M else out


# ----------------------------------------------------------------------------
# Model composition (glue in plain JAX, hot path in Pallas)
# ----------------------------------------------------------------------------
def encoder_block(p, src, heads):
    B, L, E = src.shape
    a = p["attn"]
    # v = LayerNorm1(src + linearOut(attn(src, src, src)));  dropout = identity
    v = self_attention_block(src, a["w_qkv"], a["b_qkv"], a["w_o"], a["b_o"],
                             p["ln1_g"], p["ln1_b"], heads, causal=False)
    # out = LayerNorm2(fcff(v) + v)
    out = ffn_residual_ln(v.reshape(B * L, E), p["w1"], p["b1"],
                          p["w2"], p["b2"], p["ln2_g"], p["ln2_b"])
    return out.reshape(B, L, E)


def decoder_block(p, target, enc_src, heads):
    B, L, E = target.shape
    sa = p["self_attn"]
    # v = LayerNorm1(target + linearOut(selfAttn(target, target, target, mask)))
    v = self_attention_block(target, sa["w_qkv"], sa["b_qkv"], sa["w_o"],
                             sa["b_o"], p["ln1_g"], p["ln1_b"], heads,
                             causal=True)
    # b = LayerNorm2(v + linearOut(attn(target, enc, enc)))  [query = ORIGINAL
    # target — reference quirk]
    b = cross_attention_block(target, enc_src, v, p["cross_attn"],
                              p["ln2_g"], p["ln2_b"], heads)
    # n = LayerNorm3(b + fcff(b))
    n = ffn_residual_ln(b.reshape(B * L, E), p["w1"], p["b1"],
                        p["w2"], p["b2"], p["ln3_g"], p["ln3_b"])
    return n.reshape(B, L, E)


def _coo_embed(coo, n_rows, table_w, table_b):
    """dense(COO) @ W + b done as an O(nnz*E) gather + scatter-add."""
    # TODO(synk): COO scatter-add has no clean Pallas equivalent; XLA gather/
    # scatter here replaces the previous vocab-sized one-hot matmul.
    r = coo[0].astype(jnp.int32)
    c = coo[1].astype(jnp.int32)
    v = coo[2].astype(jnp.float32)
    rows = jnp.take(table_w, c, axis=0) * v[:, None]
    out = jnp.zeros((n_rows, table_w.shape[1]), jnp.float32).at[r].add(rows)
    return out + table_b[None, :]


def embed_src_and_trg(params, cfg, batch_size, src, srcpos, trg, trgpos):
    n_src, n_trg = src.shape[1], trg.shape[1]
    src_e = _coo_embed(src, n_src, params["src_embed_w"], params["src_embed_b"])
    src_p = _coo_embed(srcpos, n_src, params["src_pos_w"], params["src_pos_b"])
    src_o = (src_e + src_p).reshape(batch_size, n_src // batch_size, -1)

    trg_e = _coo_embed(trg, n_trg, params["dst_embed_w"], params["dst_embed_b"])
    # Reference code: trg = trg_idx + trg_idx (positional embedding dropped),
    # so the dead target positional-embedding lookup is skipped entirely.
    trg_o = (trg_e + trg_e).reshape(batch_size, n_trg // batch_size, -1)
    return src_o, trg_o


def transformer_forward(params, cfg, batch_size, src, srcpos, trg, trgpos):
    if batch_size > 0:
        src3, trg3 = embed_src_and_trg(params, cfg, batch_size,
                                       src, srcpos, trg, trgpos)
    else:
        src3, trg3 = src, trg
    x = src3
    for lp in params["encoder"]:
        x = encoder_block(lp, x, cfg["heads"])
    y = trg3
    for lp in params["decoder"]:
        y = decoder_block(lp, y, x, cfg["heads"])
    B, L, E = y.shape
    out = linear(y.reshape(B * L, E), params["out_w"], params["out_b"])
    return out.reshape(B, L, -1)


# ----------------------------------------------------------------------------
# Deterministic parameter init (synthetic; no checkpoint load).
# Matmul weights are stored pre-transposed (in, out) in bf16 (MXU operands);
# biases / LN params / embedding tables stay f32.  Q/K/V and K/V are fused
# once here so the forward pass never concatenates or transposes weights.
# ----------------------------------------------------------------------------
def init_params(cfg, key):
    E = cfg["embedding_size"]
    exp = cfg["expansion"]

    def nxt():
        nonlocal key
        key, sub = jax.random.split(key)
        return sub

    def lin(n_in, n_out, w_dtype=jnp.bfloat16):
        w = (0.1 * jax.random.normal(nxt(), (n_in, n_out), jnp.float32))
        b = 0.02 * jax.random.normal(nxt(), (n_out,), jnp.float32)
        return w.astype(w_dtype), b

    def mha():
        wq, bq = lin(E, E, jnp.float32)
        wk, bk = lin(E, E, jnp.float32)
        wv, bv = lin(E, E, jnp.float32)
        wo, bo = lin(E, E)
        return dict(
            w_qkv=jnp.concatenate([wq, wk, wv], axis=1).astype(jnp.bfloat16),
            b_qkv=jnp.concatenate([bq, bk, bv], axis=0),
            w_q=wq.astype(jnp.bfloat16), b_q=bq,
            w_kv=jnp.concatenate([wk, wv], axis=1).astype(jnp.bfloat16),
            b_kv=jnp.concatenate([bk, bv], axis=0),
            w_o=wo, b_o=bo)

    def enc_block():
        w1, b1 = lin(E, exp * E)
        w2, b2 = lin(exp * E, E)
        return dict(attn=mha(),
                    ln1_g=jnp.ones((E,), jnp.float32), ln1_b=jnp.zeros((E,), jnp.float32),
                    ln2_g=jnp.ones((E,), jnp.float32), ln2_b=jnp.zeros((E,), jnp.float32),
                    w1=w1, b1=b1, w2=w2, b2=b2)

    def dec_block():
        w1, b1 = lin(E, exp * E)
        w2, b2 = lin(exp * E, E)
        return dict(self_attn=mha(), cross_attn=mha(),
                    ln1_g=jnp.ones((E,), jnp.float32), ln1_b=jnp.zeros((E,), jnp.float32),
                    ln2_g=jnp.ones((E,), jnp.float32), ln2_b=jnp.zeros((E,), jnp.float32),
                    ln3_g=jnp.ones((E,), jnp.float32), ln3_b=jnp.zeros((E,), jnp.float32),
                    w1=w1, b1=b1, w2=w2, b2=b2)

    # Embedding tables stay f32 (gather path, no MXU).
    sew, seb = lin(cfg["sourceWordCount"], E, jnp.float32)
    spw, spb = lin(cfg["sourceSentenceMaxLength"], E, jnp.float32)
    dew, deb = lin(cfg["targetWordCount"], E, jnp.float32)
    dpw, dpb = lin(cfg["targetSentenceMaxLength"], E, jnp.float32)  # dead (quirk)
    ow, ob = lin(E, cfg["targetWordCount"])

    return dict(
        src_embed_w=sew, src_embed_b=seb,
        src_pos_w=spw, src_pos_b=spb,
        dst_embed_w=dew, dst_embed_b=deb,
        dst_pos_w=dpw, dst_pos_b=dpb,
        encoder=[enc_block() for _ in range(cfg["layers"])],
        decoder=[dec_block() for _ in range(cfg["layers"])],
        out_w=ow, out_b=ob,
    )


# ----------------------------------------------------------------------------
# Example run
# ----------------------------------------------------------------------------
if __name__ == "__main__":
    cfg = dict(
        sourceWordCount=16, targetWordCount=16,
        sourceSentenceMaxLength=32, targetSentenceMaxLength=32,
        heads=4, embedding_size=32, expansion=4, layers=2,
    )
    key = jax.random.PRNGKey(0)
    key, pkey, skey, tkey = jax.random.split(key, 4)
    params = init_params(cfg, pkey)

    batch_size, src_seq, trg_seq = 2, 8, 8
    n_src = batch_size * src_seq
    n_trg = batch_size * trg_seq

    # COO-format (3, nnz) inputs: [token_row, column_id, value]; one-hot tokens.
    src_words = jax.random.randint(skey, (n_src,), 0, cfg["sourceWordCount"])
    trg_words = jax.random.randint(tkey, (n_trg,), 0, cfg["targetWordCount"])
    src_positions = jnp.tile(jnp.arange(src_seq), batch_size)
    trg_positions = jnp.tile(jnp.arange(trg_seq), batch_size)

    rows_s = jnp.arange(n_src)
    rows_t = jnp.arange(n_trg)
    src = jnp.stack([rows_s, src_words, jnp.ones((n_src,))]).astype(jnp.float32)
    srcpos = jnp.stack([rows_s, src_positions, jnp.ones((n_src,))]).astype(jnp.float32)
    trg = jnp.stack([rows_t, trg_words, jnp.ones((n_trg,))]).astype(jnp.float32)
    trgpos = jnp.stack([rows_t, trg_positions, jnp.ones((n_trg,))]).astype(jnp.float32)

    out = transformer_forward(params, cfg, batch_size, src, srcpos, trg, trgpos)
    out = jax.block_until_ready(out)
    assert out.shape == (batch_size, trg_seq, cfg["targetWordCount"])
    assert bool(jnp.all(jnp.isfinite(out)))
    print("KERNEL_OK")
</pallas_src>

<mosaic_0001>
module attributes {stable_mosaic.version = 11 : i64} {
  func.func @_self_attn_block_kernel(%arg0: i32, %arg1: memref<1x8x32xf32, #tpu.memory_space<vmem>>, %arg2: memref<32x96xbf16, #tpu.memory_space<vmem>>, %arg3: memref<1x96xf32, #tpu.memory_space<vmem>>, %arg4: memref<32x32xbf16, #tpu.memory_space<vmem>>, %arg5: memref<1x32xf32, #tpu.memory_space<vmem>>, %arg6: memref<1x32xf32, #tpu.memory_space<vmem>>, %arg7: memref<1x32xf32, #tpu.memory_space<vmem>>, %arg8: memref<1x8x32xf32, #tpu.memory_space<vmem>>, %arg9: memref<8x32xf32, #tpu.memory_space<vmem>>) attributes {dimension_semantics = [#tpu.dimension_semantics<parallel>], iteration_bounds = array<i64: 2>, scalar_prefetch = 0 : i64, scratch_operands = 1 : i64, tpu.core_type = #tpu.core_type<tc>, window_params = [{transform_indices = @transform_0, window_bounds = array<i64: 1, 8, 32>}, {pipeline_mode = #tpu.pipeline_mode<synchronous>, transform_indices = @transform_1, window_bounds = array<i64: 32, 96>}, {pipeline_mode = #tpu.pipeline_mode<synchronous>, transform_indices = @transform_2, window_bounds = array<i64: 1, 96>}, {pipeline_mode = #tpu.pipeline_mode<synchronous>, transform_indices = @transform_3, window_bounds = array<i64: 32, 32>}, {pipeline_mode = #tpu.pipeline_mode<synchronous>, transform_indices = @transform_4, window_bounds = array<i64: 1, 32>}, {pipeline_mode = #tpu.pipeline_mode<synchronous>, transform_indices = @transform_5, window_bounds = array<i64: 1, 32>}, {pipeline_mode = #tpu.pipeline_mode<synchronous>, transform_indices = @transform_6, window_bounds = array<i64: 1, 32>}, {transform_indices = @transform_7, window_bounds = array<i64: 1, 8, 32>}]} {
    %c0 = arith.constant 0 : index
    %c0_0 = arith.constant 0 : index
    %c0_1 = arith.constant 0 : index
    %0 = vector.load %arg1[%c0, %c0_0, %c0_1] : memref<1x8x32xf32, #tpu.memory_space<vmem>>, vector<1x8x32xf32>
    %1 = vector.shape_cast %0 : vector<1x8x32xf32> to vector<8x32xf32>
    %2 = arith.truncf %1 : vector<8x32xf32> to vector<8x32xbf16>
    %c0_2 = arith.constant 0 : index
    %c0_3 = arith.constant 0 : index
    %3 = vector.load %arg2[%c0_2, %c0_3] : memref<32x96xbf16, #tpu.memory_space<vmem>>, vector<32x96xbf16>
    %cst = arith.constant dense<0.000000e+00> : vector<8x96xf32>
    %4 = tpu.matmul %2, %3, %cst {dimension_numbers = #tpu.dot_dimension_numbers<[1], [0], [0], [1], [0, 0, 1, 1], [], []>} : vector<8x32xbf16>, vector<32x96xbf16>, vector<8x96xf32> -> vector<8x96xf32>
    %c0_4 = arith.constant 0 : index
    %c0_5 = arith.constant 0 : index
    %5 = vector.load %arg3[%c0_4, %c0_5] : memref<1x96xf32, #tpu.memory_space<vmem>>, vector<1x96xf32>
    %6 = vector.broadcast %5 : vector<1x96xf32> to vector<8x96xf32>
    %7 = arith.addf %4, %6 : vector<8x96xf32>
    %8 = vector.extract_strided_slice %7 {offsets = [0, 0], sizes = [8, 32], strides = [1, 1]} : vector<8x96xf32> to vector<8x32xf32>
    %9 = vector.extract_strided_slice %7 {offsets = [0, 32], sizes = [8, 32], strides = [1, 1]} : vector<8x96xf32> to vector<8x32xf32>
    %10 = vector.extract_strided_slice %7 {offsets = [0, 64], sizes = [8, 32], strides = [1, 1]} : vector<8x96xf32> to vector<8x32xf32>
    %11 = vector.extract_strided_slice %8 {offsets = [0, 0], sizes = [8, 8], strides = [1, 1]} : vector<8x32xf32> to vector<8x8xf32>
    %12 = arith.truncf %11 : vector<8x8xf32> to vector<8x8xbf16>
    %13 = vector.extract_strided_slice %9 {offsets = [0, 0], sizes = [8, 8], strides = [1, 1]} : vector<8x32xf32> to vector<8x8xf32>
    %14 = arith.truncf %13 : vector<8x8xf32> to vector<8x8xbf16>
    %15 = vector.extract_strided_slice %10 {offsets = [0, 0], sizes = [8, 8], strides = [1, 1]} : vector<8x32xf32> to vector<8x8xf32>
    %16 = arith.truncf %15 : vector<8x8xf32> to vector<8x8xbf16>
    %cst_6 = arith.constant dense<0.000000e+00> : vector<8x8xf32>
    %17 = tpu.matmul %12, %14, %cst_6 {dimension_numbers = #tpu.dot_dimension_numbers<[1], [1], [0], [0], [0, 0, 1, 0], [], []>} : vector<8x8xbf16>, vector<8x8xbf16>, vector<8x8xf32> -> vector<8x8xf32>
    %cst_7 = arith.constant 0.353553385 : f32
    %18 = vector.broadcast %cst_7 : f32 to vector<8x8xf32>
    %19 = arith.mulf %17, %18 : vector<8x8xf32>
    %cst_8 = arith.constant dense<0xFF800000> : vector<8xf32>
    %20 = vector.multi_reduction <maximumf>, %19, %cst_8 [1] : vector<8x8xf32> to vector<8xf32>
    %21 = vector.shape_cast %20 : vector<8xf32> to vector<8x1xf32>
    %22 = vector.broadcast %21 : vector<8x1xf32> to vector<8x8xf32>
    %23 = arith.subf %19, %22 : vector<8x8xf32>
    %24 = math.exp %23 : vector<8x8xf32>
    %cst_9 = arith.constant dense<0.000000e+00> : vector<8xf32>
    %25 = vector.multi_reduction <add>, %24, %cst_9 [1] : vector<8x8xf32> to vector<8xf32>
    %26 = vector.shape_cast %25 : vector<8xf32> to vector<8x1xf32>
    %27 = tpu.reciprocal %26 : vector<8x1xf32> -> vector<8x1xf32>
    %28 = vector.broadcast %27 : vector<8x1xf32> to vector<8x8xf32>
    %29 = arith.mulf %24, %28 : vector<8x8xf32>
    %30 = arith.truncf %29 : vector<8x8xf32> to vector<8x8xbf16>
    %cst_10 = arith.constant dense<0.000000e+00> : vector<8x8xf32>
    %31 = tpu.matmul %30, %16, %cst_10 {dimension_numbers = #tpu.dot_dimension_numbers<[1], [0], [0], [1], [0, 0, 1, 1], [], []>} : vector<8x8xbf16>, vector<8x8xbf16>, vector<8x8xf32> -> vector<8x8xf32>
    %c0_11 = arith.constant 0 : index
    %c0_12 = arith.constant 0 : index
    %32 = vector.load %arg9[%c0_11, %c0_12] : memref<8x32xf32, #tpu.memory_space<vmem>>, vector<8x8xf32>
    tpu.vector_store %arg9[%c0_11, %c0_12], %31 {strides = array<i32>} : memref<8x32xf32, #tpu.memory_space<vmem>>, vector<8x8xf32>,
    %33 = vector.extract_strided_slice %8 {offsets = [0, 8], sizes = [8, 8], strides = [1, 1]} : vector<8x32xf32> to vector<8x8xf32>
    %34 = arith.truncf %33 : vector<8x8xf32> to vector<8x8xbf16>
    %35 = vector.extract_strided_slice %9 {offsets = [0, 8], sizes = [8, 8], strides = [1, 1]} : vector<8x32xf32> to vector<8x8xf32>
    %36 = arith.truncf %35 : vector<8x8xf32> to vector<8x8xbf16>
    %37 = vector.extract_strided_slice %10 {offsets = [0, 8], sizes = [8, 8], strides = [1, 1]} : vector<8x32xf32> to vector<8x8xf32>
    %38 = arith.truncf %37 : vector<8x8xf32> to vector<8x8xbf16>
    %cst_13 = arith.constant dense<0.000000e+00> : vector<8x8xf32>
    %39 = tpu.matmul %34, %36, %cst_13 {dimension_numbers = #tpu.dot_dimension_numbers<[1], [1], [0], [0], [0, 0, 1, 0], [], []>} : vector<8x8xbf16>, vector<8x8xbf16>, vector<8x8xf32> -> vector<8x8xf32>
    %cst_14 = arith.constant 0.353553385 : f32
    %40 = vector.broadcast %cst_14 : f32 to vector<8x8xf32>
    %41 = arith.mulf %39, %40 : vector<8x8xf32>
    %cst_15 = arith.constant dense<0xFF800000> : vector<8xf32>
    %42 = vector.multi_reduction <maximumf>, %41, %cst_15 [1] : vector<8x8xf32> to vector<8xf32>
    %43 = vector.shape_cast %42 : vector<8xf32> to vector<8x1xf32>
    %44 = vector.broadcast %43 : vector<8x1xf32> to vector<8x8xf32>
    %45 = arith.subf %41, %44 : vector<8x8xf32>
    %46 = math.exp %45 : vector<8x8xf32>
    %cst_16 = arith.constant dense<0.000000e+00> : vector<8xf32>
    %47 = vector.multi_reduction <add>, %46, %cst_16 [1] : vector<8x8xf32> to vector<8xf32>
    %48 = vector.shape_cast %47 : vector<8xf32> to vector<8x1xf32>
    %49 = tpu.reciprocal %48 : vector<8x1xf32> -> vector<8x1xf32>
    %50 = vector.broadcast %49 : vector<8x1xf32> to vector<8x8xf32>
    %51 = arith.mulf %46, %50 : vector<8x8xf32>
    %52 = arith.truncf %51 : vector<8x8xf32> to vector<8x8xbf16>
    %cst_17 = arith.constant dense<0.000000e+00> : vector<8x8xf32>
    %53 = tpu.matmul %52, %38, %cst_17 {dimension_numbers = #tpu.dot_dimension_numbers<[1], [0], [0], [1], [0, 0, 1, 1], [], []>} : vector<8x8xbf16>, vector<8x8xbf16>, vector<8x8xf32> -> vector<8x8xf32>
    %c0_18 = arith.constant 0 : index
    %c8 = arith.constant 8 : index
    %54 = vector.load %arg9[%c0_18, %c8] : memref<8x32xf32, #tpu.memory_space<vmem>>, vector<8x8xf32>
    tpu.vector_store %arg9[%c0_18, %c8], %53 {strides = array<i32>} : memref<8x32xf32, #tpu.memory_space<vmem>>, vector<8x8xf32>,
    %55 = vector.extract_strided_slice %8 {offsets = [0, 16], sizes = [8, 8], strides = [1, 1]} : vector<8x32xf32> to vector<8x8xf32>
    %56 = arith.truncf %55 : vector<8x8xf32> to vector<8x8xbf16>
    %57 = vector.extract_strided_slice %9 {offsets = [0, 16], sizes = [8, 8], strides = [1, 1]} : vector<8x32xf32> to vector<8x8xf32>
    %58 = arith.truncf %57 : vector<8x8xf32> to vector<8x8xbf16>
    %59 = vector.extract_strided_slice %10 {offsets = [0, 16], sizes = [8, 8], strides = [1, 1]} : vector<8x32xf32> to vector<8x8xf32>
    %60 = arith.truncf %59 : vector<8x8xf32> to vector<8x8xbf16>
    %cst_19 = arith.constant dense<0.000000e+00> : vector<8x8xf32>
    %61 = tpu.matmul %56, %58, %cst_19 {dimension_numbers = #tpu.dot_dimension_numbers<[1], [1], [0], [0], [0, 0, 1, 0], [], []>} : vector<8x8xbf16>, vector<8x8xbf16>, vector<8x8xf32> -> vector<8x8xf32>
    %cst_20 = arith.constant 0.353553385 : f32
    %62 = vector.broadcast %cst_20 : f32 to vector<8x8xf32>
    %63 = arith.mulf %61, %62 : vector<8x8xf32>
    %cst_21 = arith.constant dense<0xFF800000> : vector<8xf32>
    %64 = vector.multi_reduction <maximumf>, %63, %cst_21 [1] : vector<8x8xf32> to vector<8xf32>
    %65 = vector.shape_cast %64 : vector<8xf32> to vector<8x1xf32>
    %66 = vector.broadcast %65 : vector<8x1xf32> to vector<8x8xf32>
    %67 = arith.subf %63, %66 : vector<8x8xf32>
    %68 = math.exp %67 : vector<8x8xf32>
    %cst_22 = arith.constant dense<0.000000e+00> : vector<8xf32>
    %69 = vector.multi_reduction <add>, %68, %cst_22 [1] : vector<8x8xf32> to vector<8xf32>
    %70 = vector.shape_cast %69 : vector<8xf32> to vector<8x1xf32>
    %71 = tpu.reciprocal %70 : vector<8x1xf32> -> vector<8x1xf32>
    %72 = vector.broadcast %71 : vector<8x1xf32> to vector<8x8xf32>
    %73 = arith.mulf %68, %72 : vector<8x8xf32>
    %74 = arith.truncf %73 : vector<8x8xf32> to vector<8x8xbf16>
    %cst_23 = arith.constant dense<0.000000e+00> : vector<8x8xf32>
    %75 = tpu.matmul %74, %60, %cst_23 {dimension_numbers = #tpu.dot_dimension_numbers<[1], [0], [0], [1], [0, 0, 1, 1], [], []>} : vector<8x8xbf16>, vector<8x8xbf16>, vector<8x8xf32> -> vector<8x8xf32>
    %c0_24 = arith.constant 0 : index
    %c16 = arith.constant 16 : index
    %76 = vector.load %arg9[%c0_24, %c16] : memref<8x32xf32, #tpu.memory_space<vmem>>, vector<8x8xf32>
    tpu.vector_store %arg9[%c0_24, %c16], %75 {strides = array<i32>} : memref<8x32xf32, #tpu.memory_space<vmem>>, vector<8x8xf32>,
    %77 = vector.extract_strided_slice %8 {offsets = [0, 24], sizes = [8, 8], strides = [1, 1]} : vector<8x32xf32> to vector<8x8xf32>
    %78 = arith.truncf %77 : vector<8x8xf32> to vector<8x8xbf16>
    %79 = vector.extract_strided_slice %9 {offsets = [0, 24], sizes = [8, 8], strides = [1, 1]} : vector<8x32xf32> to vector<8x8xf32>
    %80 = arith.truncf %79 : vector<8x8xf32> to vector<8x8xbf16>
    %81 = vector.extract_strided_slice %10 {offsets = [0, 24], sizes = [8, 8], strides = [1, 1]} : vector<8x32xf32> to vector<8x8xf32>
    %82 = arith.truncf %81 : vector<8x8xf32> to vector<8x8xbf16>
    %cst_25 = arith.constant dense<0.000000e+00> : vector<8x8xf32>
    %83 = tpu.matmul %78, %80, %cst_25 {dimension_numbers = #tpu.dot_dimension_numbers<[1], [1], [0], [0], [0, 0, 1, 0], [], []>} : vector<8x8xbf16>, vector<8x8xbf16>, vector<8x8xf32> -> vector<8x8xf32>
    %cst_26 = arith.constant 0.353553385 : f32
    %84 = vector.broadcast %cst_26 : f32 to vector<8x8xf32>
    %85 = arith.mulf %83, %84 : vector<8x8xf32>
    %cst_27 = arith.constant dense<0xFF800000> : vector<8xf32>
    %86 = vector.multi_reduction <maximumf>, %85, %cst_27 [1] : vector<8x8xf32> to vector<8xf32>
    %87 = vector.shape_cast %86 : vector<8xf32> to vector<8x1xf32>
    %88 = vector.broadcast %87 : vector<8x1xf32> to vector<8x8xf32>
    %89 = arith.subf %85, %88 : vector<8x8xf32>
    %90 = math.exp %89 : vector<8x8xf32>
    %cst_28 = arith.constant dense<0.000000e+00> : vector<8xf32>
    %91 = vector.multi_reduction <add>, %90, %cst_28 [1] : vector<8x8xf32> to vector<8xf32>
    %92 = vector.shape_cast %91 : vector<8xf32> to vector<8x1xf32>
    %93 = tpu.reciprocal %92 : vector<8x1xf32> -> vector<8x1xf32>
    %94 = vector.broadcast %93 : vector<8x1xf32> to vector<8x8xf32>
    %95 = arith.mulf %90, %94 : vector<8x8xf32>
    %96 = arith.truncf %95 : vector<8x8xf32> to vector<8x8xbf16>
    %cst_29 = arith.constant dense<0.000000e+00> : vector<8x8xf32>
    %97 = tpu.matmul %96, %82, %cst_29 {dimension_numbers = #tpu.dot_dimension_numbers<[1], [0], [0], [1], [0, 0, 1, 1], [], []>} : vector<8x8xbf16>, vector<8x8xbf16>, vector<8x8xf32> -> vector<8x8xf32>
    %c0_30 = arith.constant 0 : index
    %c24 = arith.constant 24 : index
    %98 = vector.load %arg9[%c0_30, %c24] : memref<8x32xf32, #tpu.memory_space<vmem>>, vector<8x8xf32>
    tpu.vector_store %arg9[%c0_30, %c24], %97 {strides = array<i32>} : memref<8x32xf32, #tpu.memory_space<vmem>>, vector<8x8xf32>,
    %c0_31 = arith.constant 0 : index
    %c0_32 = arith.constant 0 : index
    %99 = vector.load %arg9[%c0_31, %c0_32] : memref<8x32xf32, #tpu.memory_space<vmem>>, vector<8x32xf32>
    %100 = arith.truncf %99 : vector<8x32xf32> to vector<8x32xbf16>
    %c0_33 = arith.constant 0 : index
    %c0_34 = arith.constant 0 : index
    %101 = vector.load %arg4[%c0_33, %c0_34] : memref<32x32xbf16, #tpu.memory_space<vmem>>, vector<32x32xbf16>
    %cst_35 = arith.constant dense<0.000000e+00> : vector<8x32xf32>
    %102 = tpu.matmul %100, %101, %cst_35 {dimension_numbers = #tpu.dot_dimension_numbers<[1], [0], [0], [1], [0, 0, 1, 1], [], []>} : vector<8x32xbf16>, vector<32x32xbf16>, vector<8x32xf32> -> vector<8x32xf32>
    %103 = arith.addf %1, %102 : vector<8x32xf32>
    %c0_36 = arith.constant 0 : index
    %c0_37 = arith.constant 0 : index
    %104 = vector.load %arg5[%c0_36, %c0_37] : memref<1x32xf32, #tpu.memory_space<vmem>>, vector<1x32xf32>
    %105 = vector.broadcast %104 : vector<1x32xf32> to vector<8x32xf32>
    %106 = arith.addf %103, %105 : vector<8x32xf32>
    %c0_38 = arith.constant 0 : index
    %c0_39 = arith.constant 0 : index
    %107 = vector.load %arg6[%c0_38, %c0_39] : memref<1x32xf32, #tpu.memory_space<vmem>>, vector<1x32xf32>
    %c0_40 = arith.constant 0 : index
    %c0_41 = arith.constant 0 : index
    %108 = vector.load %arg7[%c0_40, %c0_41] : memref<1x32xf32, #tpu.memory_space<vmem>>, vector<1x32xf32>
    %cst_42 = arith.constant dense<0.000000e+00> : vector<8xf32>
    %109 = vector.multi_reduction <add>, %106, %cst_42 [1] : vector<8x32xf32> to vector<8xf32>
    %110 = vector.shape_cast %109 : vector<8xf32> to vector<8x1xf32>
    %cst_43 = arith.constant 3.200000e+01 : f32
    %111 = vector.broadcast %cst_43 : f32 to vector<8x1xf32>
    %112 = arith.divf %110, %111 : vector<8x1xf32>
    %113 = vector.broadcast %112 : vector<8x1xf32> to vector<8x32xf32>
    %114 = arith.subf %106, %113 : vector<8x32xf32>
    %115 = arith.mulf %114, %114 : vector<8x32xf32>
    %cst_44 = arith.constant dense<0.000000e+00> : vector<8xf32>
    %116 = vector.multi_reduction <add>, %115, %cst_44 [1] : vector<8x32xf32> to vector<8xf32>
    %117 = vector.shape_cast %116 : vector<8xf32> to vector<8x1xf32>
    %cst_45 = arith.constant 3.200000e+01 : f32
    %118 = vector.broadcast %cst_45 : f32 to vector<8x1xf32>
    %119 = arith.divf %117, %118 : vector<8x1xf32>
    %120 = vector.broadcast %112 : vector<8x1xf32> to vector<8x32xf32>
    %121 = arith.subf %106, %120 : vector<8x32xf32>
    %cst_46 = arith.constant 9.99999974E-6 : f32
    %122 = vector.broadcast %cst_46 : f32 to vector<8x1xf32>
    %123 = arith.addf %119, %122 : vector<8x1xf32>
    %124 = math.rsqrt %123 : vector<8x1xf32>
    %125 = vector.broadcast %124 : vector<8x1xf32> to vector<8x32xf32>
    %126 = arith.mulf %121, %125 : vector<8x32xf32>
    %127 = vector.broadcast %107 : vector<1x32xf32> to vector<8x32xf32>
    %128 = arith.mulf %126, %127 : vector<8x32xf32>
    %129 = vector.broadcast %108 : vector<1x32xf32> to vector<8x32xf32>
    %130 = arith.addf %128, %129 : vector<8x32xf32>
    %c0_47 = arith.constant 0 : index
    %c0_48 = arith.constant 0 : index
    %c0_49 = arith.constant 0 : index
    %131 = vector.load %arg8[%c0_47, %c0_48, %c0_49] : memref<1x8x32xf32, #tpu.memory_space<vmem>>, vector<1x8x32xf32>
    %132 = vector.shape_cast %131 : vector<1x8x32xf32> to vector<8x32xf32>
    %133 = vector.shape_cast %130 : vector<8x32xf32> to vector<1x8x32xf32>
    tpu.vector_store %arg8[%c0_47, %c0_48, %c0_49], %133 {strides = array<i32>} : memref<1x8x32xf32, #tpu.memory_space<vmem>>, vector<1x8x32xf32>,
    return
  }
  func.func @transform_0(%arg0: i32) -> (i32, i32, i32) {
    %c0_i32 = arith.constant 0 : i32
    %c0_i32_0 = arith.constant 0 : i32
    %c0_i32_1 = arith.constant 0 : i32
    return %arg0, %c0_i32, %c0_i32_0 : i32, i32, i32
  }
  func.func @transform_1(%arg0: i32) -> (i32, i32) {
    %c0_i32 = arith.constant 0 : i32
    %c0_i32_0 = arith.constant 0 : i32
    %c0_i32_1 = arith.constant 0 : i32
    return %c0_i32, %c0_i32_0 : i32, i32
  }
  func.func @transform_2(%arg0: i32) -> (i32, i32) {
    %c0_i32 = arith.constant 0 : i32
    %c0_i32_0 = arith.constant 0 : i32
    %c0_i32_1 = arith.constant 0 : i32
    return %c0_i32, %c0_i32_0 : i32, i32
  }
  func.func @transform_3(%arg0: i32) -> (i32, i32) {
    %c0_i32 = arith.constant 0 : i32
    %c0_i32_0 = arith.constant 0 : i32
    %c0_i32_1 = arith.constant 0 : i32
    return %c0_i32, %c0_i32_0 : i32, i32
  }
  func.func @transform_4(%arg0: i32) -> (i32, i32) {
    %c0_i32 = arith.constant 0 : i32
    %c0_i32_0 = arith.constant 0 : i32
    %c0_i32_1 = arith.constant 0 : i32
    return %c0_i32, %c0_i32_0 : i32, i32
  }
  func.func @transform_5(%arg0: i32) -> (i32, i32) {
    %c0_i32 = arith.constant 0 : i32
    %c0_i32_0 = arith.constant 0 : i32
    %c0_i32_1 = arith.constant 0 : i32
    return %c0_i32, %c0_i32_0 : i32, i32
  }
  func.func @transform_6(%arg0: i32) -> (i32, i32) {
    %c0_i32 = arith.constant 0 : i32
    %c0_i32_0 = arith.constant 0 : i32
    %c0_i32_1 = arith.constant 0 : i32
    return %c0_i32, %c0_i32_0 : i32, i32
  }
  func.func @transform_7(%arg0: i32) -> (i32, i32, i32) {
    %c0_i32 = arith.constant 0 : i32
    %c0_i32_0 = arith.constant 0 : i32
    %c0_i32_1 = arith.constant 0 : i32
    return %arg0, %c0_i32, %c0_i32_0 : i32, i32, i32
  }
}

</mosaic_0001>

<bundles_post_ra>
// kernel: tpu_custom_call.1
= control target key start
LH: loop header
LB: loop body
LE: loop exit
PB: predicated region body
PF: predicated region fallthrough
CT: control target
= control target key end

     0   :  { %12 = vsyncpa [#allocation4], 0  ;;  %s1835_s0 = inlined_call_operand.hbm [shape: f32[2,8,32], index: 0, kind: input, shape index: {}]   ;;  %s1836_s1 = inlined_call_operand.hbm [shape: bf16[32,96], index: 1, kind: input, shape index: {}]   ;;  %s1837_s2 = inlined_call_operand.vmem [shape: f32[1,96], index: 2, kind: input, shape index: {}]   ;;  %s1838_s3 = inlined_call_operand.hbm [shape: bf16[32,32], index: 3, kind: input, shape index: {}]   ;;  %s1839_s4 = inlined_call_operand.vmem [shape: f32[1,32], index: 4, kind: input, shape index: {}]   ;;  %s1840_s5 = inlined_call_operand.vmem [shape: f32[1,32], index: 5, kind: input, shape index: {}]   ;;  %s1841_s6 = inlined_call_operand.vmem [shape: f32[1,32], index: 6, kind: input, shape index: {}]   ;;  %s1842_s7 = inlined_call_operand.hbm [shape: f32[2,8,32], index: 7, kind: output, shape index: {}]  }
   0x1   :  { %14 = vsyncpa [#allocation4 + $0x1], 0 }
   0x2   :  { %15 = vsyncpa [#allocation7], 0 }
   0x3   :  { %16 = vsyncpa [#allocation5], 0 }
   0x4   :  { %18 = vsyncpa [#allocation5 + $0x1], 0  ;;  %s1509_s24 = smov 0   ;;  %s1511_s25 = smov 0  }
   0x5   :  { %s1513_s26 = smov 0   ;;  %s1515_s27 = smov 0  }
   0x6 LB: > { %s1530_s28 = sadd.s32 4294967295, %s1445_s27   ;;  %s1062_s29 = sadd.s32 4294967294, %s1445_s27   ;;  %s1445_s27 = sphi %s1515_s27, %s1862_s27   ;;  %s1441_s26 = sphi %s1513_s26, %s1861_s26   ;;  %s1437_s25 = sphi %s1511_s25, %s1860_s25   ;;  %s1433_s24 = sphi %s1509_s24, %s1859_s24  }
   0x7   : > { %p44_p0 = scmp.ne.s32.totalorder %s1437_s25, %s1433_s24  ;;  %p1843_p1 = scmp.eq.s32.totalorder %s1530_s28, 0 }
   0x8   : > { %p200_p3 = scmp.eq.s32.totalorder %s1062_s29, 1  ;;  %p1063_p5 = scmp.ge.s32.totalorder %s1445_s27, 1 }
   0x9   : > { %p1539_p4 = por %p1843_p1, %p44_p0  ;;  %p207_p7 = scmp.lt.s32.totalorder %s1445_s27, 3 }
   0xa   : > { %p1544_p6 = por %p200_p3, %p44_p0  ;;  %s1447_s10 = smov [#allocation6]  }
   0xb   : > { %s1846_s30 = scalar_select %p1539_p4, 1, 0 }
   0xc   : > { %s1847_s8 = scalar_select %p1544_p6, 1, 0 }
   0xd   : > { %p1549_p8 = pnand %p1063_p5, %p207_p7  ;;  %s219_s11 = sshll.u32 %s1447_s10, 4  ;;  %s1553_s11 = int_to_ptr.vmem [resolvable:$true] %s219_s11 }
   0xe   : > { %s1448_s13 = smov [#allocation8]   ;;  %s1289_s17 = scalar_lea.hbm %s1836_s1, 256 }
   0xf   : > { %p1194_p9 = pneg %p1549_p8  ;;  %s235_s14 = sshll.u32 %s1448_s13, 4  ;;  %s1564_s14 = int_to_ptr.vmem [resolvable:$true] %s235_s14 }
  0x10   : > { %p1290_p12 = scmp.ne.s32.totalorder %s1836_s1, %s1289_s17  ;;  %p1296_p5 = scmp.lt.u32.totalorder %s1289_s17, %s1836_s1 }
  0x11   : > { %p1560_p11 = pnand %p1194_p9, %p1843_p1 }
  0x13   : > { %p1291_p13 = pneg %p1560_p11 }
  0x15   : > { %p1292_p0 = pnand %p1291_p13, %p1290_p12 }
  0x17   : > { %p1293_p3 = pneg %p1292_p0 }
  0x19   : > { %p1298_p7 = pnand %p1296_p5, %p1293_p3 }
  0x1b   : > { %1301 = shalt.err (!%p1298_p7)
}
  0x1c   : > { %s1302_s22 = scalar_lea.vmem %s1553_s11, 256  ;;  %p1310_p2 = scmp.lt.s32.totalorder %s1553_s11, %s1553_s11 }
  0x1d   : > { %p1303_p9 = scmp.ne.s32.totalorder %s1553_s11, %s1302_s22  ;;  %p1311_p12 = scmp.lt.s32.totalorder %s1302_s22, %s1302_s22 }
  0x1f   : > { %p1305_p10 = pnand %p1303_p9, %p1291_p13  ;;  %p1312_p0 = por %p1311_p12, %p1310_p2 }
  0x21   : > { %p1306_p1 = pneg %p1305_p10 }
  0x23   : > { %p1313_p6 = pnand %p1312_p0, %p1306_p1 }
  0x25   : > { %1316 = shalt.err (!%p1313_p6)
}
  0x26   : > { %s1449_s23 = smov 64   ;;  %s1450_s29 = smov 4  }
  0x27   : > { %1197 = dma.hbm_to_vmem [thread:$0]  (!%p1560_p11), %s1836_s1, 256, %s1553_s11, [#allocation7], %s1449_s23, %s1449_s23, %s1450_s29  }
  0x28   : > { %s1317_s17 = scalar_lea.hbm %s1838_s3, 256 }
  0x29   : > { %p1318_p2 = scmp.ne.s32.totalorder %s1838_s3, %s1317_s17  ;;  %p1324_p10 = scmp.lt.u32.totalorder %s1317_s17, %s1838_s3 }
  0x2b   : > { %p1320_p1 = pnand %p1318_p2, %p1291_p13 }
  0x2d   : > { %p1321_p6 = pneg %p1320_p1 }
  0x2f   : > { %p1326_p3 = pnand %p1324_p10, %p1321_p6 }
  0x31   : > { %1329 = shalt.err (!%p1326_p3)
}
  0x32   : > { %s1330_s11 = scalar_lea.vmem %s1564_s14, 256  ;;  %p1338_p12 = scmp.lt.s32.totalorder %s1564_s14, %s1564_s14 }
  0x33   : > { %p1331_p5 = scmp.ne.s32.totalorder %s1564_s14, %s1330_s11  ;;  %p1339_p0 = scmp.lt.s32.totalorder %s1330_s11, %s1330_s11 }
  0x35   : > { %p1333_p7 = pnand %p1331_p5, %p1291_p13  ;;  %p1340_p2 = por %p1339_p0, %p1338_p12 }
  0x37   : > { %p1334_p9 = pneg %p1333_p7 }
  0x39   : > { %p1341_p1 = pnand %p1340_p2, %p1334_p9 }
  0x3b   : > { %1344 = shalt.err (!%p1341_p1)
}
  0x3c   : > { %1200 = dma.hbm_to_vmem [thread:$0]  (!%p1560_p11), %s1838_s3, 256, %s1564_s14, [#allocation7], %s1449_s23, %s1449_s23, %s1450_s29  }
  0x3d   : > { %s1619_s13 = sadd.s32 1, %s1445_s27   ;;  %s31_s12 = sadd.s32 1, %s1441_s26 }
  0x3e   : > { %s28_s15 = ssub.s32 %s1445_s27, %s1619_s13  ;;  %p38_p13 = scmp.ne.s32.totalorder %s1441_s26, %s1437_s25 }
  0x3f   : > { %p29_p6 = scmp.eq.s32.totalorder %s28_s15, 0  ;;  %p39_p10 = scmp.eq.s32.totalorder %s1445_s27, 0 }
  0x40   : > { %p1850_p3 = scmp.eq.s32.totalorder %s1530_s28, 1  ;;  %p1211_p7 = scmp.lt.s32.totalorder %s1445_s27, 2 }
  0x41   : > { %s1635_s17 = scalar_select %p29_p6, %s1441_s26, %s31_s12  }
  0x42   : > { %p1629_p5 = por %p1850_p3, %p38_p13  ;;  %p40_p9 = por %p39_p10, %p38_p13 }
  0x43   : > { %s258_s18 = sand.u32 1, %s1441_s26   ;;  %s1068_s14 = sshll.u32 %s1445_s27, 7 }
  0x44   : > { %s1851_s16 = scalar_select %p1629_p5, 1, 0 }
  0x45   : > { %s1067_s19 = sshll.u32 %s258_s18, 3  ;;  %s1642_s20 = scalar_lea.hbm %s1835_s0, %s1068_s14 }
  0x46   : > { %s262_s21 = scalar_lea.vmem [#allocation3], %s1067_s19  ;;  %p1646_p11 = pnand %p1211_p7, %p40_p9 }
  0x47   : > { %s269_s11 = sshll.u32 %s262_s21, 4  ;;  %s259_s10 = scalar_lea.sflag [#allocation4], %s258_s18  ;;  %s1644_s11 = int_to_ptr.vmem [resolvable:$true] %s269_s11 }
  0x48   : > { %s1345_s12 = scalar_lea.hbm %s1642_s20, 128  ;;  %p1347_p0 = pneg %p1646_p11 }
  0x49   : > { %p1346_p12 = scmp.ne.s32.totalorder %s1642_s20, %s1345_s12  ;;  %s1350_s14 = scalar_lea.hbm %s1835_s0, 256 }
  0x4a   : > { %p1351_p13 = scmp.lt.u32.totalorder %s1642_s20, %s1835_s0  ;;  %p1352_p6 = scmp.lt.u32.totalorder %s1350_s14, %s1345_s12 }
  0x4b   : > { %p1348_p2 = pnand %p1347_p0, %p1346_p12  ;;  %p1354_p3 = scmp.lt.u32.totalorder %s1345_s12, %s1642_s20 }
  0x4c   : > { %p1353_p10 = por %p1352_p6, %p1351_p13 }
  0x4d   : > { %p1349_p1 = pneg %p1348_p2 }
  0x4e   : > { %p1355_p7 = por %p1354_p3, %p1353_p10 }
  0x50   : > { %p1356_p9 = pnand %p1355_p7, %p1349_p1 }
  0x52   : > { %1359 = shalt.err (!%p1356_p9)
}
  0x53   : > { %s1360_s18 = scalar_lea.vmem %s1644_s11, 128  ;;  %s1451_s21 = smov [#allocation3]  }
  0x54   : > { %p1361_p12 = scmp.ne.s32.totalorder %s1644_s11, %s1360_s18  ;;  %s1365_s15 = sshll.u32 %s1451_s21, 4  ;;  %s1366_s15 = int_to_ptr.vmem [resolvable:$false] %s1365_s15 }
  0x55   : > { %s1367_s19 = scalar_lea.vmem %s1366_s15, 256  ;;  %p1368_p4 = scmp.lt.s32.totalorder %s1644_s11, %s1366_s15 }
  0x56   : > { %p1363_p2 = pnand %p1361_p12, %p1347_p0  ;;  %p1369_p13 = scmp.lt.s32.totalorder %s1367_s19, %s1360_s18 }
  0x58   : > { %p1364_p5 = pneg %p1363_p2  ;;  %p1370_p6 = por %p1369_p13, %p1368_p4 }
  0x5a   : > { %p1371_p10 = pnand %p1370_p6, %p1364_p5 }
  0x5c   : > { %1374 = shalt.err (!%p1371_p10)
}
  0x5d   : > { %1204 = dma.hbm_to_vmem [thread:$0]  (!%p1646_p11), %s1642_s20, 128, %s1644_s11, %s259_s10  }
  0x5e   : > { %278 = sbr.rel (%p1549_p8) target bundleno = 1926 (0x786), region = 48  ;;  %s1678_s12 = sand.u32 (!%p1549_p8), 1, %s1437_s25  }
  0x5f   : > { %s1070_s14 = sshll.u32 (!%p1549_p8), %s1678_s12, 3  ;;  %s281_s23 = scalar_lea.sflag (!%p1549_p8), [#allocation4], %s1678_s12 }
  0x60   : > { %s284_s29 = scalar_lea.vmem (!%p1549_p8), [#allocation3], %s1070_s14  ;;  %p1853_p4 = scmp.ne.s32.totalorder (!%p1549_p8), %s1846_s30, 0 }
  0x65   : > { %1420 = dma.done.wait (%p1853_p4), %s281_s23, 128  }
  0x66   : > { %1422 = vsyncadd (%p1853_p4), %s281_s23, 4294967168  ;;  %p1854_p5 = scmp.eq.s32.totalorder %s1530_s28, 0 }
  0x68   : > { %1424 = dma.done.wait (%p1854_p5), [#allocation7], 512   ;;  %p1855_p8 = pmov %p1854_p5 }
  0x69   : > { %v1452_v0 = vmov 0.0   ;;  %vm1453_vm0 = vmmov 0   ;;  %v1267_v1 = vld [vmem:[#allocation6] sm:$0xff]   ;;  %v1268_v2 = vld [vmem:[#allocation6 + $0x8] sm:$0xff]   ;;  %v1698_v3 = vld [vmem:[%s284_s29] sm:$0xff]  ;;  %vm349_vm1 = vcmask 261120  }
  0x6a   : > { %1426 = vsyncadd (%p1855_p8), [#allocation7], 4294966784  ;;  %1118 = vmatprep.subr.bf16.mxu0 %v1452_v0  ;;  %1122 = vmatprep.mubr.msk.bf16.mxu0 %vm1453_vm0, %v1452_v0  ;;  %v325_v4 = vpack.c.bf16 %v1698_v3, %v1698_v3  ;;  %v1074_v5 = vld [vmem:[%s1837_s2] ss:$0 sm:$0xff]  ;;  %s1454_s20 = smov 120   ;;  %s1455_s11 = smov 96  }
  0x6b   : > { %1126 = vmatprep.subr.bf16.mxu1 %v1452_v0  ;;  %1128 = vmatprep.mubr.msk.bf16.mxu1 %vm1453_vm0, %v1452_v0  ;;  %s1456_s22 = smov 80   ;;  %s1457_s10 = smov 88   ;;  %vm397_vm2 = vcmask 64512   ;;  %vm462_vm3 = vcmask 1043456   ;;  %vm622_vm4 = vcmask 130112   ;;  %vm739_vm5 = vcmask 195712  }
  0x6c   : > { %1119 = vmatpush3.bf16.msra.mxu0 %v1267_v1  ;;  %s1458_s18 = smov 72   ;;  %s1459_s21 = smov 112   ;;  %vm856_vm6 = vcmask 261312  }
  0x6d   : > { %1120 = vmatprep.subr.bf16.mxu0 %v1452_v0  ;;  %s1460_s15 = smov 104   ;;  %s1461_s19 = smov 56  }
  0x6e   : > { %s1462_s23 = smov 64   ;;  %s1463_s29 = smov 40  }
  0x6f   : > { %s1464_s30 = smov 48   ;;  %s1465_s9 = smov 8  }
  0x70   : > { %1121 = vmatpush3.bf16.msra.mxu0 %v1268_v2  ;;  %p1856_p0 = scmp.ne.s32.totalorder %s1851_s16, 0 }
  0x71   : > { %1132 = vmatprep.subr.bf16.mxu0 %v1452_v0 }
  0x73   : > { %1123 = vmatmul.mubr.msk.bf16.vlgmr.msra.gmra.mrb[0].mxu0 %vm349_vm1, %v325_v4 }
  0x74   : > { %1134 = vmatprep.mubr.msk.bf16.mxu0 %vm1453_vm0, %v1452_v0 }
 0x146   : > { %v387_v6 = vpop.f32.mrb[0].mxu0 }
 0x147   : > { %v388_v7 = vadd.f32 %v1074_v5, %v387_v6  ;;  %v1124_v8 = vpop.f32.mrb[1].mxu0 }
 0x148   : > { %v390_v9 = vpop.f32.mrb[2].mxu0 }
 0x149   : > { %v1710_v10 = vpack.c.bf16 %v388_v7, %v388_v7  ;;  %v1125_v11 = vpop.f32.mrb[3].mxu0 }
 0x14b   : > { %507 = vrot.lane.b32.xlu1 %v1710_v10, %s1454_s20  ;;  %395 = vrot.lane.b32.xlu0 %v1710_v10, %s1455_s11  ;;  %s1466_s20 = smov 16   ;;  %s1467_s11 = smov 24  }
 0x14f   : > { %626 = vrot.lane.b32.xlu1 %v1710_v10, %s1456_s22  ;;  %509 = vrot.lane.b32.xlu0 %v1710_v10, %s1457_s10  ;;  %s960_s22 = scalar_lea.sflag [#allocation5], %s1678_s12 }
 0x153   : > { %743 = vrot.lane.b32.xlu1 %v1710_v10, %s1458_s18  ;;  %624 = vrot.lane.b32.xlu0 %v1710_v10, %s1459_s21 }
 0x157   : > { %741 = vrot.lane.b32.xlu0 %v1710_v10, %s1460_s15 }
 0x1bd   : > { %v396_v12 = vpop.permute.xlu0 %395  ;;  %v508_v15 = vpop.permute.xlu1 %507 }
 0x1be   : > { %v402_v13 = vsel %vm397_vm2, %v396_v12, 0 }
 0x1bf   : > { %1127 = vmatpush3.bf16.xpose.msra.mxu1 %v402_v13 }
 0x1c0   : > { %1138 = vmatprep.subr.bf16.mxu1 %v1452_v0 }
 0x1c1   : > { %v510_v14 = vpop.permute.xlu0 %509  ;;  %v627_v17 = vpop.permute.xlu1 %626 }
 0x1c2   : > { %v515_v16 = vsel %vm397_vm2, %v510_v14, 0  ;;  %v632_v18 = vsel %vm397_vm2, %v627_v17, 0 }
 0x1c5   : > { %v744_v19 = vpop.permute.xlu1 %743  ;;  %v625_v20 = vpop.permute.xlu0 %624 }
 0x1c6   : > { %1129 = vmatmul.mubr.msk.bf16.vlgmr.msra.gmra.mrb[0].mxu1 %vm397_vm2, %v1710_v10  ;;  %v749_v21 = vsel %vm397_vm2, %v744_v19, 0 }
 0x1c7   : > { %1139 = vmatpush3.bf16.xpose.msra.mxu1 %v515_v16  ;;  %1140 = vmatprep.mubr.msk.bf16.mxu1 %vm1453_vm0, %v1452_v0 }
 0x1c8   : > { %1150 = vmatprep.subr.bf16.mxu1 %v1452_v0 }
 0x1c9   : > { %v742_v22 = vpop.permute.xlu0 %741 }
 0x1ce   : > { %1141 = vmatmul.mubr.msk.bf16.vlgmr.msra.gmra.mrb[4].mxu1 %vm397_vm2, %v508_v15 }
 0x1cf   : > { %1151 = vmatpush3.bf16.xpose.msra.mxu1 %v632_v18  ;;  %1152 = vmatprep.mubr.msk.bf16.mxu1 %vm1453_vm0, %v1452_v0 }
 0x1d0   : > { %1162 = vmatprep.subr.bf16.mxu1 %v1452_v0 }
 0x1d6   : > { %1153 = vmatmul.mubr.msk.bf16.vlgmr.msra.gmra.mrb[8].mxu1 %vm397_vm2, %v625_v20 }
 0x1d7   : > { %1163 = vmatpush3.bf16.xpose.msra.mxu1 %v749_v21  ;;  %1164 = vmatprep.mubr.msk.bf16.mxu1 %vm1453_vm0, %v1452_v0 }
 0x1d8   : > { %1174 = vmatprep.subr.bf16.mxu1 %v1452_v0 }
 0x1de   : > { %1165 = vmatmul.mubr.msk.bf16.vlgmr.msra.gmra.mrb[12].mxu1 %vm397_vm2, %v742_v22 }
 0x1df   : > { %1178 = vmatprep.mubr.msk.bf16.mxu1 %vm1453_vm0, %v1452_v0 }
 0x299   : > { %v438_v23 = vpop.f32.mrb[0].mxu1 }
 0x29a   : > { %v444_v24 = vmul.f32 0.35355338, %v438_v23  ;;  %v1130_v25 = vpop.f32.mrb[1].mxu1 }
 0x29b   : > { %v441_v26 = vpop.f32.mrb[2].mxu1 }
 0x29c   : > { %v1131_v27 = vpop.f32.mrb[3].mxu1  ;;  %v445_v28 = vsel %vm397_vm2, %v444_v24, -inf }
 0x29d   : > { %446 = vmax.xlane.f32.xlu1 %v445_v28 }
 0x2a1   : > { %v551_v29 = vpop.f32.mrb[4].mxu1 }
 0x2a2   : > { %v557_v30 = vmul.f32 0.35355338, %v551_v29  ;;  %v1142_v31 = vpop.f32.mrb[5].mxu1 }
 0x2a3   : > { %v554_v32 = vpop.f32.mrb[6].mxu1 }
 0x2a4   : > { %v1143_v33 = vpop.f32.mrb[7].mxu1  ;;  %v558_v34 = vsel %vm397_vm2, %v557_v30, -inf }
 0x2a5   : > { %559 = vmax.xlane.f32.xlu0 %v558_v34 }
 0x2a9   : > { %v668_v35 = vpop.f32.mrb[8].mxu1 }
 0x2aa   : > { %v674_v36 = vmul.f32 0.35355338, %v668_v35  ;;  %v1154_v37 = vpop.f32.mrb[9].mxu1 }
 0x2ab   : > { %v671_v38 = vpop.f32.mrb[10].mxu1  ;;  %v1269_v37 = vld [vmem:[#allocation8] sm:$0xff]  }
 0x2ac   : > { %v1155_v39 = vpop.f32.mrb[11].mxu1  ;;  %v675_v40 = vsel %vm397_vm2, %v674_v36, -inf  ;;  %1175 = vmatpush3.bf16.msra.mxu1 %v1269_v37  ;;  %v1270_v38 = vld [vmem:[#allocation8 + $0x8] sm:$0xff]  }
 0x2ad   : > { %676 = vmax.xlane.f32.xlu0 %v675_v40  ;;  %1176 = vmatprep.subr.bf16.mxu1 %v1452_v0 }
 0x2b0   : > { %1177 = vmatpush3.bf16.msra.mxu1 %v1270_v38 }
 0x2b1   : > { %v785_v41 = vpop.f32.mrb[12].mxu1 }
 0x2b2   : > { %v791_v42 = vmul.f32 0.35355338, %v785_v41  ;;  %v1166_v43 = vpop.f32.mrb[13].mxu1 }
 0x2b3   : > { %v788_v44 = vpop.f32.mrb[14].mxu1 }
 0x2b4   : > { %v1167_v45 = vpop.f32.mrb[15].mxu1  ;;  %v792_v46 = vsel %vm397_vm2, %v791_v42, -inf }
 0x2b5   : > { %793 = vmax.xlane.f32.xlu1 %v792_v46 }
 0x32a   : > { %v447_v47 = vpop.xlane.xlu1 %446 }
 0x32b   : > { %v448_v48 = vsub.f32 %v444_v24, %v447_v47 }
 0x32d   : > { %v449_v49 = vmul.f32 1.442695, %v448_v48 }
 0x32f   : > { %1271 = vpow2.f32 %v449_v49 }
 0x332   : > { %v560_v50 = vpop.xlane.xlu0 %559 }
 0x333   : > { %v561_v51 = vsub.f32 %v557_v30, %v560_v50 }
 0x335   : > { %v562_v52 = vmul.f32 1.442695, %v561_v51 }
 0x337   : > { %1273 = vpow2.f32 %v562_v52  ;;  %v1089_v52 = vld [vmem:[%s1839_s4] ss:$0 sm:$0xff] }
 0x339   : > { %v1272_v53 = vpop.eup %1271 }
 0x33a   : > { %v677_v54 = vpop.xlane.xlu0 %676  ;;  %v451_v55 = vsel %vm397_vm2, %v1272_v53, 0.0 }
 0x33b   : > { %v678_v56 = vsub.f32 %v674_v36, %v677_v54  ;;  %452 = vadd.xlane.f32.xlu0 %v451_v55 }
 0x33d   : > { %v679_v57 = vmul.f32 1.442695, %v678_v56 }
 0x33f   : > { %1275 = vpow2.f32 %v679_v57 }
 0x341   : > { %v1274_v58 = vpop.eup %1273 }
 0x342   : > { %v564_v59 = vsel %vm397_vm2, %v1274_v58, 0.0  ;;  %v794_v62 = vpop.xlane.xlu1 %793 }
 0x343   : > { %565 = vadd.xlane.f32.xlu1 %v564_v59  ;;  %v795_v63 = vsub.f32 %v791_v42, %v794_v62 }
 0x345   : > { %v796_v1 = vmul.f32 1.442695, %v795_v63 }
 0x347   : > { %1277 = vpow2.f32 %v796_v1 }
 0x349   : > { %v1276_v60 = vpop.eup %1275 }
 0x34a   : > { %v681_v61 = vsel %vm397_vm2, %v1276_v60, 0.0 }
 0x34b   : > { %682 = vadd.xlane.f32.xlu0 %v681_v61 }
 0x351   : > { %v1278_v2 = vpop.eup %1277 }
 0x352   : > { %v798_v4 = vsel %vm397_vm2, %v1278_v2, 0.0 }
 0x354   : > { %570 = vrot.lane.b32.xlu1 %v1710_v10, %s1461_s19 }
 0x361   : > { %457 = vrot.lane.b32.xlu0 %v1710_v10, %s1462_s23  ;;  %s1093_s23 = sshll.u32 %s1530_s28, 7  ;;  %s1468_s28 = smov [#allocation9]  }
 0x365   : > { %804 = vrot.lane.b32.xlu0 %v1710_v10, %s1463_s29  ;;  %s322_s29 = scalar_lea.vmem [#allocation9], %s1070_s14  ;;  %s1379_s14 = sshll.u32 %s1468_s28, 4  ;;  %s1380_s14 = int_to_ptr.vmem [resolvable:$false] %s1379_s14 }
 0x366   : > { %s1381_s18 = scalar_lea.vmem %s1380_s14, 256 }
 0x378   : > { %799 = vadd.xlane.f32.xlu1 %v798_v4 }
 0x389   : > { %687 = vrot.lane.b32.xlu1 %v1710_v10, %s1464_s30  ;;  %s973_s30 = sshll.u32 %s322_s29, 4  ;;  %s1792_s30 = int_to_ptr.vmem [resolvable:$true] %s973_s30 }
 0x38a   : > { %s1375_s10 = scalar_lea.vmem %s1792_s30, 128  ;;  %p1382_p7 = scmp.lt.s32.totalorder %s1792_s30, %s1380_s14 }
 0x38b   : > { %p1376_p11 = scmp.ne.s32.totalorder %s1792_s30, %s1375_s10  ;;  %p1383_p9 = scmp.lt.s32.totalorder %s1381_s18, %s1375_s10 }
 0x38d   : > { %p1377_p1 = pnand %p1376_p11, %p1856_p0  ;;  %p1384_p12 = por %p1383_p9, %p1382_p7 }
 0x38f   : > { %p1378_p3 = pneg %p1377_p1 }
 0x391   : > { %p1385_p2 = pnand %p1384_p12, %p1378_p3 }
 0x3c8   : > { %v453_v5 = vpop.xlane.xlu0 %452 }
 0x3c9   : > { %1279 = vrcp.f32 %v453_v5  ;;  %v1090_v5 = vld [vmem:[%s1840_s5] ss:$0 sm:$0xff] }
 0x3d0   : > { %v566_v6 = vpop.xlane.xlu1 %565 }
 0x3d1   : > { %1281 = vrcp.f32 %v566_v6 }
 0x3d3   : > { %v1280_v7 = vpop.eup %1279 }
 0x3d4   : > { %v455_v9 = vmul.f32 %v1280_v7, %v1272_v53  ;;  %v571_v13 = vpop.permute.xlu1 %570  ;;  %v1091_v7 = vld [vmem:[%s1841_s6] ss:$0 sm:$0xff] }
 0x3d5   : > { %v576_v16 = vsel %vm462_vm3, %v571_v13, 0 }
 0x3d6   : > { %v456_v14 = vpack.c.bf16 %v455_v9, %v455_v9 }
 0x3d8   : > { %v683_v8 = vpop.xlane.xlu0 %682 }
 0x3d9   : > { %1283 = vrcp.f32 %v683_v8 }
 0x3db   : > { %v1282_v15 = vpop.eup %1281 }
 0x3dc   : > { %v458_v11 = vpop.permute.xlu0 %457  ;;  %v568_v10 = vmul.f32 %v1282_v15, %v1274_v58 }
 0x3dd   : > { %v464_v12 = vsel %vm462_vm3, %v458_v11, 0 }
 0x3de   : > { %1133 = vmatpush3.bf16.msra.mxu0 %v464_v12  ;;  %v569_v17 = vpack.c.bf16 %v568_v10, %v568_v10 }
 0x3df   : > { %1144 = vmatprep.subr.bf16.mxu0 %v1452_v0 }
 0x3e0   : > { %v805_v23 = vpop.permute.xlu0 %804 }
 0x3e1   : > { %1135 = vmatmul.mubr.msk.bf16.vlgmr.msra.gmra.mrb[4].mxu0 %vm397_vm2, %v456_v14  ;;  %v810_v25 = vsel %vm462_vm3, %v805_v23, 0 }
 0x3e2   : > { %1145 = vmatpush3.bf16.msra.mxu0 %v576_v16  ;;  %1146 = vmatprep.mubr.msk.bf16.mxu0 %vm1453_vm0, %v1452_v0 }
 0x3e3   : > { %1156 = vmatprep.subr.bf16.mxu0 %v1452_v0  ;;  %v1284_v18 = vpop.eup %1283 }
 0x3e4   : > { %v685_v20 = vmul.f32 %v1284_v18, %v1276_v60 }
 0x3e6   : > { %v686_v24 = vpack.c.bf16 %v685_v20, %v685_v20 }
 0x3e9   : > { %1147 = vmatmul.mubr.msk.bf16.vlgmr.msra.gmra.mrb[8].mxu0 %vm397_vm2, %v569_v17 }
 0x3ea   : > { %1158 = vmatprep.mubr.msk.bf16.mxu0 %vm1453_vm0, %v1452_v0 }
 0x405   : > { %v800_v19 = vpop.xlane.xlu1 %799 }
 0x406   : > { %1285 = vrcp.f32 %v800_v19 }
 0x409   : > { %v688_v21 = vpop.permute.xlu1 %687 }
 0x40a   : > { %v693_v22 = vsel %vm462_vm3, %v688_v21, 0 }
 0x40b   : > { %1157 = vmatpush3.bf16.msra.mxu0 %v693_v22 }
 0x40c   : > { %1168 = vmatprep.subr.bf16.mxu0 %v1452_v0 }
 0x40e   : > { %1159 = vmatmul.mubr.msk.bf16.vlgmr.msra.gmra.mrb[12].mxu0 %vm397_vm2, %v686_v24 }
 0x40f   : > { %1169 = vmatpush3.bf16.msra.mxu0 %v810_v25  ;;  %1170 = vmatprep.mubr.msk.bf16.mxu0 %vm1453_vm0, %v1452_v0 }
 0x410   : > { %v1286_v26 = vpop.eup %1285 }
 0x411   : > { %v802_v27 = vmul.f32 %v1286_v26, %v1278_v2 }
 0x413   : > { %v803_v28 = vpack.c.bf16 %v802_v27, %v802_v27 }
 0x416   : > { %1171 = vmatmul.mubr.msk.bf16.vlgmr.msra.gmra.mrb[16].mxu0 %vm397_vm2, %v803_v28 }
 0x4b4   : > { %v500_v29 = vpop.f32.mrb[4].mxu0 }
 0x4b5   : > { %506 = vst.msk [vmem:[#allocation2] sm:$0xff] %vm397_vm2, %v500_v29  ;;  %v1136_v30 = vpop.f32.mrb[5].mxu0 }
 0x4b6   : > { %v503_v31 = vpop.f32.mrb[6].mxu0 }
 0x4b7   : > { %v1137_v32 = vpop.f32.mrb[7].mxu0 }
 0x4bc   : > { %v612_v33 = vpop.f32.mrb[8].mxu0 }
 0x4bd   : > { %619 = vrot.lane.b32.xlu1 %v612_v33, %s1465_s9  ;;  %v1148_v34 = vpop.f32.mrb[9].mxu0 }
 0x4be   : > { %v615_v35 = vpop.f32.mrb[10].mxu0 }
 0x4bf   : > { %v1149_v36 = vpop.f32.mrb[11].mxu0 }
 0x4e1   : > { %v729_v39 = vpop.f32.mrb[12].mxu0 }
 0x4e2   : > { %736 = vrot.lane.b32.xlu0 %v729_v39, %s1466_s20  ;;  %v1160_v40 = vpop.f32.mrb[13].mxu0 }
 0x4e3   : > { %v732_v41 = vpop.f32.mrb[14].mxu0 }
 0x4e4   : > { %v1161_v42 = vpop.f32.mrb[15].mxu0 }
 0x4e9   : > { %v846_v43 = vpop.f32.mrb[16].mxu0 }
 0x4ea   : > { %853 = vrot.lane.b32.xlu1 %v846_v43, %s1467_s11  ;;  %v1172_v44 = vpop.f32.mrb[17].mxu0  ;;  %s1790_s11 = scalar_lea.hbm %s1842_s7, %s1093_s23 }
 0x4eb   : > { %v849_v45 = vpop.f32.mrb[18].mxu0 }
 0x4ec   : > { %v1173_v46 = vpop.f32.mrb[19].mxu0 }
 0x52f   : > { %v620_v47 = vpop.permute.xlu1 %619 }
 0x530   : > { %623 = vst.msk [vmem:[#allocation2] sm:$0xff] %vm622_vm4, %v620_v47 }
 0x554   : > { %v737_v48 = vpop.permute.xlu0 %736 }
 0x555   : > { %740 = vst.msk [vmem:[#allocation2] sm:$0xff] %vm739_vm5, %v737_v48 }
 0x55c   : > { %v854_v0 = vpop.permute.xlu1 %853 }
 0x55d   : > { %857 = vst.msk [vmem:[#allocation2] sm:$0xff] %vm856_vm6, %v854_v0 }
 0x564   : > { %v858_v49 = vld [vmem:[#allocation2] sm:$0xff] }
 0x565   : > { %v859_v50 = vpack.c.bf16 %v858_v49, %v858_v49 }
 0x567   : > { %1179 = vmatmul.mubr.msk.bf16.vlgmr.msra.gmra.mrb[16].mxu1 %vm349_vm1, %v859_v50 }
 0x63a   : > { %v913_v51 = vpop.f32.mrb[16].mxu1 }
 0x63b   : > { %v919_v53 = vadd.f32 %v913_v51, %v1698_v3  ;;  %v1180_v54 = vpop.f32.mrb[17].mxu1 }
 0x63c   : > { %v916_v55 = vpop.f32.mrb[18].mxu1 }
 0x63d   : > { %v1181_v56 = vpop.f32.mrb[19].mxu1  ;;  %v927_v57 = vadd.f32 %v1089_v52, %v919_v53 }
 0x63f   : > { %v930_v58 = vsel %vm349_vm1, %v927_v57, 0.0 }
 0x640   : > { %931 = vadd.xlane.f32.xlu0 %v930_v58 }
 0x6cd   : > { %v932_v59 = vpop.xlane.xlu0 %931 }
 0x6ce   : > { %v934_v60 = vmul.f32 0.03125, %v932_v59 }
 0x6d0   : > { %v935_v61 = vsub.f32 %v927_v57, %v934_v60 }
 0x6d2   : > { %v936_v62 = vmul.f32 %v935_v61, %v935_v61 }
 0x6d4   : > { %v937_v63 = vsel %vm349_vm1, %v936_v62, 0.0 }
 0x6d5   : > { %938 = vadd.xlane.f32.xlu1 %v937_v63 }
 0x762   : > { %v939_v1 = vpop.xlane.xlu1 %938 }
 0x763   : > { %v940_v2 = vmul.f32 0.03125, %v939_v1 }
 0x765   : > { %v941_v3 = vadd.f32 1e-05, %v940_v2 }
 0x767   : > { %1287 = vrsqrt.f32 %v941_v3 }
 0x771   : > { %v1288_v4 = vpop.eup %1287 }
 0x772   : > { %v943_v6 = vmul.f32 %v1288_v4, %v935_v61 }
 0x774   : > { %v950_v8 = vmul.f32 %v1090_v5, %v943_v6 }
 0x776   : > { %v957_v9 = vadd.f32 %v1091_v7, %v950_v8 }
 0x778   : > { %958 = vst.msk [vmem:[%s322_s29] sm:$0xff] %vm349_vm1, %v957_v9 }
 0x779   : > { %1388 = shalt.err (!%p1385_p2)
}
 0x77a   : > { %s1389_s12 = scalar_lea.hbm %s1790_s11, 128  ;;  %s1393_s19 = scalar_lea.hbm %s1842_s7, 256 }
 0x77b   : > { %p1390_p13 = scmp.ne.s32.totalorder %s1790_s11, %s1389_s12  ;;  %p1394_p4 = scmp.lt.u32.totalorder %s1790_s11, %s1842_s7 }
 0x77c   : > { %p1395_p5 = scmp.lt.u32.totalorder %s1393_s19, %s1389_s12  ;;  %p1397_p11 = scmp.lt.u32.totalorder %s1389_s12, %s1790_s11 }
 0x77d   : > { %p1391_p6 = pnand %p1390_p13, %p1856_p0 }
 0x77e   : > { %p1396_p8 = por %p1395_p5, %p1394_p4 }
 0x77f   : > { %p1392_p10 = pneg %p1391_p6 }
 0x780   : > { %p1398_p1 = por %p1397_p11, %p1396_p8 }
 0x782   : > { %p1399_p3 = pnand %p1398_p1, %p1392_p10 }
 0x784   : > { %1402 = shalt.err (!%p1399_p3)
}
 0x785   : > { %1192 = dma.vmem_to_hbm [thread:$0]  (%p1856_p0), %s1792_s30, 128, %s1790_s11, %s960_s22  }
 0x786 PF: > { %s985_s9 = sand.u32 1, %s1433_s24   ;;  %p1857_p7 = scmp.ne.s32.totalorder %s1847_s8, 0 }
 0x787   : > { %p1858_p9 = scmp.ge.s32.totalorder %s1445_s27, 2  ;;  %s986_s20 = scalar_lea.sflag [#allocation5], %s985_s9 }
 0x789   : > { %p1206_p12 = pnand %p1858_p9, %p1857_p7 }
 0x78b   : > { %1428 = dma.done.wait (!%p1206_p12), %s986_s20, 128  }
 0x78c   : > { %1430 = vsyncadd (!%p1206_p12), %s986_s20, 4294967168  ;;  %p21_p2 = scmp.ge.s32.totalorder %s1619_s13, 4   ;;  %s1859_s24 = smov %s1437_s25 }
 0x78d   : > { %s1860_s25 = smov %s1441_s26  ;;  %s1861_s26 = smov %s1635_s17 }
 0x78e   : > { %s1862_s27 = smov %s1619_s13  ;;  %23 = sbr.rel (!%p21_p2) target bundleno = 6 (0x6), region = 101 }
 0x795   :  { %991 = vsyncpa [#allocation4], 1 }
 0x796   :  { %993 = vsyncpa [#allocation4 + $0x1], 1 }
 0x797   :  { %994 = vsyncpa [#allocation7], 1 }
 0x798   :  { %995 = vsyncpa [#allocation5], 1 }
 0x799   :  { %997 = vsyncpa [#allocation5 + $0x1], 1 }

</bundles_post_ra>
